<compile_context>
chip_gen: v6e
topology: v6e:2x2x1
jax: 0.10.0
libtpu: 0.0.40
codegen_flags: <defaults>
</compile_context>

<pallas_src>
import functools

import jax
import jax.numpy as jnp
from jax import lax
from jax.experimental import pallas as pl
from jax.experimental.pallas import tpu as pltpu


def lstm_kernel(x_ref, h0_ref, c0_ref, wih_ref, whh_ref, b_ref, wlin_ref, blin_ref,
                out_ref, xproj_ref, h_ref, c_ref):
    """One seq-chunk of the LSTM recurrence; Linear + LogSoftmax emitted on the last chunk.

    x_ref     : (chunk_steps*batch, input_size)  -- current chunk of the flattened sequence
    h0/c0_ref : (batch, hidden)                  -- initial state (used only on chunk 0)
    wih_ref   : (input_size, 4*hidden)           -- W_ih^T
    whh_ref   : (hidden, 4*hidden)               -- W_hh^T
    b_ref     : (1, 4*hidden)                    -- b_ih + b_hh
    wlin/blin : (hidden, out), (1, out)
    xproj_ref : VMEM scratch (chunk_steps*batch, 4*hidden) -- hoisted input projection
    h_ref/c_ref: VMEM scratch (batch, hidden)    -- carry across grid steps (chunks)
    """
    batch, H = h0_ref.shape
    chunk_rows = xproj_ref.shape[0]
    chunk_steps = chunk_rows // batch
    ci = pl.program_id(0)

    # First chunk: load the initial hidden/cell state into the persistent carry scratch.
    @pl.when(ci == 0)
    def _():
        h_ref[...] = h0_ref[...]
        c_ref[...] = c0_ref[...]

    # Hoisted input projection for this chunk: ONE MXU matmul + fused bias (off the recurrence).
    xproj_ref[...] = (jnp.dot(x_ref[...], wih_ref[...],
                              preferred_element_type=jnp.float32)
                      + b_ref[...])                               # (chunk_rows, 4H)

    # W_hh: hoist into vregs only while it is small (<= 16 vregs); otherwise keep it a VMEM
    # ref operand so large H does not blow the register file (spill-bound regression).
    hoist_whh = (4 * H * H * 4) <= 16 * 4096
    w_hh_vregs = whh_ref[...] if hoist_whh else None

    # Lane mask used to fuse the 4 gate activations into a single tanh:
    #   sigmoid(x) = 0.5 * (tanh(0.5 * x) + 1)   (i, f, o lanes)
    #   tanh(x)                                  (g lanes: [2H, 3H))
    lane = lax.broadcasted_iota(jnp.int32, (batch, 4 * H), 1)
    is_g = (lane >= 2 * H) & (lane < 3 * H)

    def step(t, carry):
        h, c = carry                                              # (batch, H) vreg-carried
        start = t * batch
        if batch % 8 == 0:
            start = pl.multiple_of(start, 8)                      # aligned sublane load hint
        xp_t = xproj_ref[pl.ds(start, batch), :]                  # off the h-dependency chain
        w_hh = w_hh_vregs if hoist_whh else whh_ref[...]
        gates = xp_t + jnp.dot(h, w_hh, preferred_element_type=jnp.float32)

        z = jnp.tanh(jnp.where(is_g, gates, gates * 0.5))         # single EUP tanh, 128 lanes
        act = jnp.where(is_g, z, 0.5 * (z + 1.0))                 # sigmoid lanes fixed on VPU

        i_g = act[:, 0 * H:1 * H]
        f_g = act[:, 1 * H:2 * H]
        g_g = act[:, 2 * H:3 * H]
        o_g = act[:, 3 * H:4 * H]

        c_new = f_g * c + i_g * g_g
        h_new = o_g * jnp.tanh(c_new)
        return (h_new, c_new)

    # Full unroll while the chunk is short and W_hh is register-resident; partial unroll
    # otherwise to keep vreg pressure (h/c/act live ranges) under control.
    unroll = True if (chunk_steps <= 16 and hoist_whh) else min(4, chunk_steps)
    h_fin, c_fin = lax.fori_loop(0, chunk_steps, step, (h_ref[...], c_ref[...]),
                                 unroll=unroll)
    h_ref[...] = h_fin
    c_ref[...] = c_fin

    # Last chunk: out[-1] == h_fin; Dropout(0.6) is identity in eval; Linear + LogSoftmax.
    @pl.when(ci == pl.num_programs(0) - 1)
    def _():
        y = (jnp.dot(h_fin, wlin_ref[...], preferred_element_type=jnp.float32)
             + blin_ref[...])                                     # (batch, output_size)
        y = y - jnp.max(y, axis=1, keepdims=True)
        lse = jnp.log(jnp.sum(jnp.exp(y), axis=1, keepdims=True))
        out_ref[...] = (y - lse).astype(out_ref.dtype)


def _pick_chunk_steps(seq, batch, max_chunk_steps):
    """Largest divisor of seq with (chunk*batch) % 8 == 0 (sublane tile) and <= max_chunk_steps.

    Falls back to the whole sequence (a full-extent block is always layout-legal)."""
    candidates = [cs for cs in range(1, seq + 1)
                  if seq % cs == 0 and cs <= max_chunk_steps and (cs * batch) % 8 == 0]
    return max(candidates) if candidates else seq


@functools.partial(jax.jit, static_argnames=("max_chunk_steps",))
def lstm_forward(x, h0, c0, w_ih_t, w_hh_t, b, w_lin_t, b_lin, *, max_chunk_steps=256):
    seq, batch, in_dim = x.shape
    hidden = h0.shape[1]
    out_size = w_lin_t.shape[1]

    chunk_steps = _pick_chunk_steps(seq, batch, max_chunk_steps)
    n_chunks = seq // chunk_steps
    chunk_rows = chunk_steps * batch

    # Flatten (seq, batch, in) -> (seq*batch, in) outside the kernel (free metadata reshape).
    x2d = x.reshape(seq * batch, in_dim)

    # Rough VMEM footprint; pass an explicit scoped-VMEM limit once we outgrow the most
    # conservative default (v5e: 16 MiB).  For the toy shapes this stays None.
    f32 = 4
    est = (2 * chunk_rows * in_dim * f32                          # x chunk (double-buffered)
           + 2 * (in_dim + hidden) * 4 * hidden * f32             # W_ih^T, W_hh^T
           + 2 * (4 * hidden + hidden * out_size + out_size + 2 * batch * hidden) * f32
           + chunk_rows * 4 * hidden * f32                        # xproj scratch
           + 2 * batch * hidden * f32                             # h/c carry scratch
           + 2 * batch * out_size * f32)                          # output block
    vmem_limit = None
    if est > 12 * 2**20:
        vmem_limit = int(min(2 * est, 56 * 2**20))

    return pl.pallas_call(
        lstm_kernel,
        out_shape=jax.ShapeDtypeStruct((batch, out_size), jnp.float32),
        grid=(n_chunks,),
        in_specs=[
            pl.BlockSpec((chunk_rows, in_dim), lambda c: (c, 0)),        # x, streamed per chunk
            pl.BlockSpec((batch, hidden), lambda c: (0, 0)),             # h0
            pl.BlockSpec((batch, hidden), lambda c: (0, 0)),             # c0
            pl.BlockSpec((in_dim, 4 * hidden), lambda c: (0, 0)),        # W_ih^T
            pl.BlockSpec((hidden, 4 * hidden), lambda c: (0, 0)),        # W_hh^T
            pl.BlockSpec((1, 4 * hidden), lambda c: (0, 0)),             # b_ih + b_hh
            pl.BlockSpec((hidden, out_size), lambda c: (0, 0)),          # W_lin^T
            pl.BlockSpec((1, out_size), lambda c: (0, 0)),               # b_lin
        ],
        out_specs=pl.BlockSpec((batch, out_size), lambda c: (0, 0)),
        scratch_shapes=[
            pltpu.VMEM((chunk_rows, 4 * hidden), jnp.float32),   # chunk-local input projection
            pltpu.VMEM((batch, hidden), jnp.float32),            # h carry across chunks
            pltpu.VMEM((batch, hidden), jnp.float32),            # c carry across chunks
        ],
        compiler_params=pltpu.CompilerParams(
            dimension_semantics=("arbitrary",),                   # sequential recurrence
            vmem_limit_bytes=vmem_limit),
    )(x2d, h0, c0, w_ih_t, w_hh_t, b, w_lin_t, b_lin)


def reference_forward(x, h0, c0, w_ih_t, w_hh_t, b, w_lin_t, b_lin):
    """Pure-JAX reference of the same forward pass."""
    H = h0.shape[1]
    h, c = h0, c0
    for t in range(x.shape[0]):
        gates = x[t] @ w_ih_t + h @ w_hh_t + b
        i = jax.nn.sigmoid(gates[:, 0 * H:1 * H])
        f = jax.nn.sigmoid(gates[:, 1 * H:2 * H])
        g = jnp.tanh(gates[:, 2 * H:3 * H])
        o = jax.nn.sigmoid(gates[:, 3 * H:4 * H])
        c = f * c + i * g
        h = o * jnp.tanh(c)
    y = h @ w_lin_t + b_lin
    return jax.nn.log_softmax(y, axis=1)


if __name__ == "__main__":
    # Small shapes consistent with the module (input_size == hidden_size, batch == 1).
    seq = 16
    batch = 1
    input_size = 32
    hidden_size = 32
    output_size = 16

    key = jax.random.PRNGKey(0)
    ks = jax.random.split(key, 9)
    bound = 1.0 / jnp.sqrt(hidden_size)

    # Parameters (PyTorch-style uniform(-1/sqrt(H), 1/sqrt(H))), stored pre-transposed so the
    # kernel does x @ W_ih^T as a plain matmul.
    w_ih_t = jax.random.uniform(ks[0], (input_size, 4 * hidden_size), jnp.float32, -bound, bound)
    w_hh_t = jax.random.uniform(ks[1], (hidden_size, 4 * hidden_size), jnp.float32, -bound, bound)
    b_ih = jax.random.uniform(ks[2], (1, 4 * hidden_size), jnp.float32, -bound, bound)
    b_hh = jax.random.uniform(ks[3], (1, 4 * hidden_size), jnp.float32, -bound, bound)
    b_gates = b_ih + b_hh
    w_lin_t = jax.random.uniform(ks[4], (hidden_size, output_size), jnp.float32, -bound, bound)
    b_lin = jax.random.uniform(ks[5], (1, output_size), jnp.float32, -bound, bound)

    # Inputs and initHidden() (randn, as in the module).
    x = jax.random.normal(ks[6], (seq, batch, input_size), jnp.float32)
    h0 = jax.random.normal(ks[7], (batch, input_size), jnp.float32)     # (1,1,input_size) squeezed
    c0 = jax.random.normal(ks[8], (batch, hidden_size), jnp.float32)    # (1,1,hidden_size) squeezed

    # max_chunk_steps=8 -> grid=(2,), exercising the chunked/streamed recurrence carry path.
    out = lstm_forward(x, h0, c0, w_ih_t, w_hh_t, b_gates, w_lin_t, b_lin, max_chunk_steps=8)
    out = jax.block_until_ready(out)

    ref = reference_forward(x, h0, c0, w_ih_t, w_hh_t, b_gates, w_lin_t, b_lin)
    assert out.shape == (batch, output_size)
    # Slightly relaxed tolerance: kernel computes sigmoid via the tanh identity (exact math,
    # different transcendental path), so allow a few extra ULPs vs. the jax.nn.sigmoid reference.
    assert jnp.allclose(out, ref, atol=5e-5, rtol=5e-5), "mismatch vs JAX reference"

    print("KERNEL_OK")
</pallas_src>

<mosaic_0001>
module attributes {stable_mosaic.version = 11 : i64} {
  func.func @lstm_kernel(%arg0: i32, %arg1: memref<8x32xf32, #tpu.memory_space<vmem>>, %arg2: memref<1x32xf32, #tpu.memory_space<vmem>>, %arg3: memref<1x32xf32, #tpu.memory_space<vmem>>, %arg4: memref<32x128xf32, #tpu.memory_space<vmem>>, %arg5: memref<32x128xf32, #tpu.memory_space<vmem>>, %arg6: memref<1x128xf32, #tpu.memory_space<vmem>>, %arg7: memref<32x16xf32, #tpu.memory_space<vmem>>, %arg8: memref<1x16xf32, #tpu.memory_space<vmem>>, %arg9: memref<1x16xf32, #tpu.memory_space<vmem>>, %arg10: memref<8x128xf32, #tpu.memory_space<vmem>>, %arg11: memref<1x32xf32, #tpu.memory_space<vmem>>, %arg12: memref<1x32xf32, #tpu.memory_space<vmem>>) attributes {dimension_semantics = [#tpu.dimension_semantics<arbitrary>], iteration_bounds = array<i64: 2>, scalar_prefetch = 0 : i64, scratch_operands = 3 : i64, tpu.core_type = #tpu.core_type<tc>, window_params = [{transform_indices = @transform_0, window_bounds = array<i64: 8, 32>}, {pipeline_mode = #tpu.pipeline_mode<synchronous>, transform_indices = @transform_1, window_bounds = array<i64: 1, 32>}, {pipeline_mode = #tpu.pipeline_mode<synchronous>, transform_indices = @transform_2, window_bounds = array<i64: 1, 32>}, {pipeline_mode = #tpu.pipeline_mode<synchronous>, transform_indices = @transform_3, window_bounds = array<i64: 32, 128>}, {pipeline_mode = #tpu.pipeline_mode<synchronous>, transform_indices = @transform_4, window_bounds = array<i64: 32, 128>}, {pipeline_mode = #tpu.pipeline_mode<synchronous>, transform_indices = @transform_5, window_bounds = array<i64: 1, 128>}, {pipeline_mode = #tpu.pipeline_mode<synchronous>, transform_indices = @transform_6, window_bounds = array<i64: 32, 16>}, {pipeline_mode = #tpu.pipeline_mode<synchronous>, transform_indices = @transform_7, window_bounds = array<i64: 1, 16>}, {pipeline_mode = #tpu.pipeline_mode<synchronous>, transform_indices = @transform_8, window_bounds = array<i64: 1, 16>}]} {
    %c0_i32 = arith.constant 0 : i32
    %0 = arith.cmpi eq, %arg0, %c0_i32 : i32
    %1 = arith.extui %0 : i1 to i32
    %c0_i32_0 = arith.constant 0 : i32
    %2 = arith.cmpi ne, %1, %c0_i32_0 : i32
    scf.if %2 {
      %c0_69 = arith.constant 0 : index
      %c0_70 = arith.constant 0 : index
      %208 = vector.load %arg2[%c0_69, %c0_70] : memref<1x32xf32, #tpu.memory_space<vmem>>, vector<1x32xf32>
      %c0_71 = arith.constant 0 : index
      %c0_72 = arith.constant 0 : index
      %209 = vector.load %arg11[%c0_71, %c0_72] : memref<1x32xf32, #tpu.memory_space<vmem>>, vector<1x32xf32>
      tpu.vector_store %arg11[%c0_71, %c0_72], %208 {strides = array<i32>} : memref<1x32xf32, #tpu.memory_space<vmem>>, vector<1x32xf32>,
      %c0_73 = arith.constant 0 : index
      %c0_74 = arith.constant 0 : index
      %210 = vector.load %arg3[%c0_73, %c0_74] : memref<1x32xf32, #tpu.memory_space<vmem>>, vector<1x32xf32>
      %c0_75 = arith.constant 0 : index
      %c0_76 = arith.constant 0 : index
      %211 = vector.load %arg12[%c0_75, %c0_76] : memref<1x32xf32, #tpu.memory_space<vmem>>, vector<1x32xf32>
      tpu.vector_store %arg12[%c0_75, %c0_76], %210 {strides = array<i32>} : memref<1x32xf32, #tpu.memory_space<vmem>>, vector<1x32xf32>,
    } else {
    }
    %c0 = arith.constant 0 : index
    %c0_1 = arith.constant 0 : index
    %3 = vector.load %arg1[%c0, %c0_1] : memref<8x32xf32, #tpu.memory_space<vmem>>, vector<8x32xf32>
    %c0_2 = arith.constant 0 : index
    %c0_3 = arith.constant 0 : index
    %4 = vector.load %arg4[%c0_2, %c0_3] : memref<32x128xf32, #tpu.memory_space<vmem>>, vector<32x128xf32>
    %cst = arith.constant dense<0.000000e+00> : vector<8x128xf32>
    %5 = tpu.matmul %3, %4, %cst {dimension_numbers = #tpu.dot_dimension_numbers<[1], [0], [0], [1], [0, 0, 1, 1], [], []>} : vector<8x32xf32>, vector<32x128xf32>, vector<8x128xf32> -> vector<8x128xf32>
    %c0_4 = arith.constant 0 : index
    %c0_5 = arith.constant 0 : index
    %6 = vector.load %arg6[%c0_4, %c0_5] : memref<1x128xf32, #tpu.memory_space<vmem>>, vector<1x128xf32>
    %7 = vector.broadcast %6 : vector<1x128xf32> to vector<8x128xf32>
    %8 = arith.addf %5, %7 : vector<8x128xf32>
    %c0_6 = arith.constant 0 : index
    %c0_7 = arith.constant 0 : index
    %9 = vector.load %arg10[%c0_6, %c0_7] : memref<8x128xf32, #tpu.memory_space<vmem>>, vector<8x128xf32>
    tpu.vector_store %arg10[%c0_6, %c0_7], %8 {strides = array<i32>} : memref<8x128xf32, #tpu.memory_space<vmem>>, vector<8x128xf32>,
    %c0_8 = arith.constant 0 : index
    %c0_9 = arith.constant 0 : index
    %10 = vector.load %arg5[%c0_8, %c0_9] : memref<32x128xf32, #tpu.memory_space<vmem>>, vector<32x128xf32>
    %11 = tpu.iota {dimensions = array<i32: 1>} : vector<1x128xi32>
    %c64_i32 = arith.constant 64 : i32
    %12 = vector.broadcast %c64_i32 : i32 to vector<1x128xi32>
    %13 = arith.cmpi sge, %11, %12 : vector<1x128xi32>
    %c96_i32 = arith.constant 96 : i32
    %14 = vector.broadcast %c96_i32 : i32 to vector<1x128xi32>
    %15 = arith.cmpi slt, %11, %14 : vector<1x128xi32>
    %16 = arith.andi %13, %15 : vector<1x128xi1>
    %c0_10 = arith.constant 0 : index
    %c0_11 = arith.constant 0 : index
    %17 = vector.load %arg11[%c0_10, %c0_11] : memref<1x32xf32, #tpu.memory_space<vmem>>, vector<1x32xf32>
    %c0_12 = arith.constant 0 : index
    %c0_13 = arith.constant 0 : index
    %18 = vector.load %arg12[%c0_12, %c0_13] : memref<1x32xf32, #tpu.memory_space<vmem>>, vector<1x32xf32>
    %c0_i32_14 = arith.constant 0 : i32
    %c1_i32 = arith.constant 1 : i32
    %19 = arith.muli %c0_i32_14, %c1_i32 : i32
    %20 = arith.index_cast %19 : i32 to index
    %c0_15 = arith.constant 0 : index
    %21 = vector.load %arg10[%20, %c0_15] : memref<8x128xf32, #tpu.memory_space<vmem>>, vector<1x128xf32>
    %cst_16 = arith.constant dense<0.000000e+00> : vector<1x128xf32>
    %22 = tpu.matmul %17, %10, %cst_16 {dimension_numbers = #tpu.dot_dimension_numbers<[1], [0], [0], [1], [0, 0, 1, 1], [], []>} : vector<1x32xf32>, vector<32x128xf32>, vector<1x128xf32> -> vector<1x128xf32>
    %23 = arith.addf %21, %22 : vector<1x128xf32>
    %cst_17 = arith.constant 5.000000e-01 : f32
    %24 = vector.broadcast %cst_17 : f32 to vector<1x128xf32>
    %25 = arith.mulf %23, %24 : vector<1x128xf32>
    %26 = arith.select %16, %23, %25 : vector<1x128xi1>, vector<1x128xf32>
    %27 = math.tanh %26 : vector<1x128xf32>
    %cst_18 = arith.constant 1.000000e+00 : f32
    %28 = vector.broadcast %cst_18 : f32 to vector<1x128xf32>
    %29 = arith.addf %27, %28 : vector<1x128xf32>
    %cst_19 = arith.constant 5.000000e-01 : f32
    %30 = vector.broadcast %cst_19 : f32 to vector<1x128xf32>
    %31 = arith.mulf %30, %29 : vector<1x128xf32>
    %32 = arith.select %16, %27, %31 : vector<1x128xi1>, vector<1x128xf32>
    %33 = vector.extract_strided_slice %32 {offsets = [0, 0], sizes = [1, 32], strides = [1, 1]} : vector<1x128xf32> to vector<1x32xf32>
    %34 = vector.extract_strided_slice %32 {offsets = [0, 32], sizes = [1, 32], strides = [1, 1]} : vector<1x128xf32> to vector<1x32xf32>
    %35 = vector.extract_strided_slice %32 {offsets = [0, 64], sizes = [1, 32], strides = [1, 1]} : vector<1x128xf32> to vector<1x32xf32>
    %36 = vector.extract_strided_slice %32 {offsets = [0, 96], sizes = [1, 32], strides = [1, 1]} : vector<1x128xf32> to vector<1x32xf32>
    %37 = arith.mulf %34, %18 : vector<1x32xf32>
    %38 = arith.mulf %33, %35 : vector<1x32xf32>
    %39 = arith.addf %37, %38 : vector<1x32xf32>
    %40 = math.tanh %39 : vector<1x32xf32>
    %41 = arith.mulf %36, %40 : vector<1x32xf32>
    %c1_i32_20 = arith.constant 1 : i32
    %c1_i32_21 = arith.constant 1 : i32
    %42 = arith.muli %c1_i32_20, %c1_i32_21 : i32
    %43 = arith.index_cast %42 : i32 to index
    %c0_22 = arith.constant 0 : index
    %44 = vector.load %arg10[%43, %c0_22] : memref<8x128xf32, #tpu.memory_space<vmem>>, vector<1x128xf32>
    %cst_23 = arith.constant dense<0.000000e+00> : vector<1x128xf32>
    %45 = tpu.matmul %41, %10, %cst_23 {dimension_numbers = #tpu.dot_dimension_numbers<[1], [0], [0], [1], [0, 0, 1, 1], [], []>} : vector<1x32xf32>, vector<32x128xf32>, vector<1x128xf32> -> vector<1x128xf32>
    %46 = arith.addf %44, %45 : vector<1x128xf32>
    %cst_24 = arith.constant 5.000000e-01 : f32
    %47 = vector.broadcast %cst_24 : f32 to vector<1x128xf32>
    %48 = arith.mulf %46, %47 : vector<1x128xf32>
    %49 = arith.select %16, %46, %48 : vector<1x128xi1>, vector<1x128xf32>
    %50 = math.tanh %49 : vector<1x128xf32>
    %cst_25 = arith.constant 1.000000e+00 : f32
    %51 = vector.broadcast %cst_25 : f32 to vector<1x128xf32>
    %52 = arith.addf %50, %51 : vector<1x128xf32>
    %cst_26 = arith.constant 5.000000e-01 : f32
    %53 = vector.broadcast %cst_26 : f32 to vector<1x128xf32>
    %54 = arith.mulf %53, %52 : vector<1x128xf32>
    %55 = arith.select %16, %50, %54 : vector<1x128xi1>, vector<1x128xf32>
    %56 = vector.extract_strided_slice %55 {offsets = [0, 0], sizes = [1, 32], strides = [1, 1]} : vector<1x128xf32> to vector<1x32xf32>
    %57 = vector.extract_strided_slice %55 {offsets = [0, 32], sizes = [1, 32], strides = [1, 1]} : vector<1x128xf32> to vector<1x32xf32>
    %58 = vector.extract_strided_slice %55 {offsets = [0, 64], sizes = [1, 32], strides = [1, 1]} : vector<1x128xf32> to vector<1x32xf32>
    %59 = vector.extract_strided_slice %55 {offsets = [0, 96], sizes = [1, 32], strides = [1, 1]} : vector<1x128xf32> to vector<1x32xf32>
    %60 = arith.mulf %57, %39 : vector<1x32xf32>
    %61 = arith.mulf %56, %58 : vector<1x32xf32>
    %62 = arith.addf %60, %61 : vector<1x32xf32>
    %63 = math.tanh %62 : vector<1x32xf32>
    %64 = arith.mulf %59, %63 : vector<1x32xf32>
    %c2_i32 = arith.constant 2 : i32
    %c1_i32_27 = arith.constant 1 : i32
    %65 = arith.muli %c2_i32, %c1_i32_27 : i32
    %66 = arith.index_cast %65 : i32 to index
    %c0_28 = arith.constant 0 : index
    %67 = vector.load %arg10[%66, %c0_28] : memref<8x128xf32, #tpu.memory_space<vmem>>, vector<1x128xf32>
    %cst_29 = arith.constant dense<0.000000e+00> : vector<1x128xf32>
    %68 = tpu.matmul %64, %10, %cst_29 {dimension_numbers = #tpu.dot_dimension_numbers<[1], [0], [0], [1], [0, 0, 1, 1], [], []>} : vector<1x32xf32>, vector<32x128xf32>, vector<1x128xf32> -> vector<1x128xf32>
    %69 = arith.addf %67, %68 : vector<1x128xf32>
    %cst_30 = arith.constant 5.000000e-01 : f32
    %70 = vector.broadcast %cst_30 : f32 to vector<1x128xf32>
    %71 = arith.mulf %69, %70 : vector<1x128xf32>
    %72 = arith.select %16, %69, %71 : vector<1x128xi1>, vector<1x128xf32>
    %73 = math.tanh %72 : vector<1x128xf32>
    %cst_31 = arith.constant 1.000000e+00 : f32
    %74 = vector.broadcast %cst_31 : f32 to vector<1x128xf32>
    %75 = arith.addf %73, %74 : vector<1x128xf32>
    %cst_32 = arith.constant 5.000000e-01 : f32
    %76 = vector.broadcast %cst_32 : f32 to vector<1x128xf32>
    %77 = arith.mulf %76, %75 : vector<1x128xf32>
    %78 = arith.select %16, %73, %77 : vector<1x128xi1>, vector<1x128xf32>
    %79 = vector.extract_strided_slice %78 {offsets = [0, 0], sizes = [1, 32], strides = [1, 1]} : vector<1x128xf32> to vector<1x32xf32>
    %80 = vector.extract_strided_slice %78 {offsets = [0, 32], sizes = [1, 32], strides = [1, 1]} : vector<1x128xf32> to vector<1x32xf32>
    %81 = vector.extract_strided_slice %78 {offsets = [0, 64], sizes = [1, 32], strides = [1, 1]} : vector<1x128xf32> to vector<1x32xf32>
    %82 = vector.extract_strided_slice %78 {offsets = [0, 96], sizes = [1, 32], strides = [1, 1]} : vector<1x128xf32> to vector<1x32xf32>
    %83 = arith.mulf %80, %62 : vector<1x32xf32>
    %84 = arith.mulf %79, %81 : vector<1x32xf32>
    %85 = arith.addf %83, %84 : vector<1x32xf32>
    %86 = math.tanh %85 : vector<1x32xf32>
    %87 = arith.mulf %82, %86 : vector<1x32xf32>
    %c3_i32 = arith.constant 3 : i32
    %c1_i32_33 = arith.constant 1 : i32
    %88 = arith.muli %c3_i32, %c1_i32_33 : i32
    %89 = arith.index_cast %88 : i32 to index
    %c0_34 = arith.constant 0 : index
    %90 = vector.load %arg10[%89, %c0_34] : memref<8x128xf32, #tpu.memory_space<vmem>>, vector<1x128xf32>
    %cst_35 = arith.constant dense<0.000000e+00> : vector<1x128xf32>
    %91 = tpu.matmul %87, %10, %cst_35 {dimension_numbers = #tpu.dot_dimension_numbers<[1], [0], [0], [1], [0, 0, 1, 1], [], []>} : vector<1x32xf32>, vector<32x128xf32>, vector<1x128xf32> -> vector<1x128xf32>
    %92 = arith.addf %90, %91 : vector<1x128xf32>
    %cst_36 = arith.constant 5.000000e-01 : f32
    %93 = vector.broadcast %cst_36 : f32 to vector<1x128xf32>
    %94 = arith.mulf %92, %93 : vector<1x128xf32>
    %95 = arith.select %16, %92, %94 : vector<1x128xi1>, vector<1x128xf32>
    %96 = math.tanh %95 : vector<1x128xf32>
    %cst_37 = arith.constant 1.000000e+00 : f32
    %97 = vector.broadcast %cst_37 : f32 to vector<1x128xf32>
    %98 = arith.addf %96, %97 : vector<1x128xf32>
    %cst_38 = arith.constant 5.000000e-01 : f32
    %99 = vector.broadcast %cst_38 : f32 to vector<1x128xf32>
    %100 = arith.mulf %99, %98 : vector<1x128xf32>
    %101 = arith.select %16, %96, %100 : vector<1x128xi1>, vector<1x128xf32>
    %102 = vector.extract_strided_slice %101 {offsets = [0, 0], sizes = [1, 32], strides = [1, 1]} : vector<1x128xf32> to vector<1x32xf32>
    %103 = vector.extract_strided_slice %101 {offsets = [0, 32], sizes = [1, 32], strides = [1, 1]} : vector<1x128xf32> to vector<1x32xf32>
    %104 = vector.extract_strided_slice %101 {offsets = [0, 64], sizes = [1, 32], strides = [1, 1]} : vector<1x128xf32> to vector<1x32xf32>
    %105 = vector.extract_strided_slice %101 {offsets = [0, 96], sizes = [1, 32], strides = [1, 1]} : vector<1x128xf32> to vector<1x32xf32>
    %106 = arith.mulf %103, %85 : vector<1x32xf32>
    %107 = arith.mulf %102, %104 : vector<1x32xf32>
    %108 = arith.addf %106, %107 : vector<1x32xf32>
    %109 = math.tanh %108 : vector<1x32xf32>
    %110 = arith.mulf %105, %109 : vector<1x32xf32>
    %c4_i32 = arith.constant 4 : i32
    %c1_i32_39 = arith.constant 1 : i32
    %111 = arith.muli %c4_i32, %c1_i32_39 : i32
    %112 = arith.index_cast %111 : i32 to index
    %c0_40 = arith.constant 0 : index
    %113 = vector.load %arg10[%112, %c0_40] : memref<8x128xf32, #tpu.memory_space<vmem>>, vector<1x128xf32>
    %cst_41 = arith.constant dense<0.000000e+00> : vector<1x128xf32>
    %114 = tpu.matmul %110, %10, %cst_41 {dimension_numbers = #tpu.dot_dimension_numbers<[1], [0], [0], [1], [0, 0, 1, 1], [], []>} : vector<1x32xf32>, vector<32x128xf32>, vector<1x128xf32> -> vector<1x128xf32>
    %115 = arith.addf %113, %114 : vector<1x128xf32>
    %cst_42 = arith.constant 5.000000e-01 : f32
    %116 = vector.broadcast %cst_42 : f32 to vector<1x128xf32>
    %117 = arith.mulf %115, %116 : vector<1x128xf32>
    %118 = arith.select %16, %115, %117 : vector<1x128xi1>, vector<1x128xf32>
    %119 = math.tanh %118 : vector<1x128xf32>
    %cst_43 = arith.constant 1.000000e+00 : f32
    %120 = vector.broadcast %cst_43 : f32 to vector<1x128xf32>
    %121 = arith.addf %119, %120 : vector<1x128xf32>
    %cst_44 = arith.constant 5.000000e-01 : f32
    %122 = vector.broadcast %cst_44 : f32 to vector<1x128xf32>
    %123 = arith.mulf %122, %121 : vector<1x128xf32>
    %124 = arith.select %16, %119, %123 : vector<1x128xi1>, vector<1x128xf32>
    %125 = vector.extract_strided_slice %124 {offsets = [0, 0], sizes = [1, 32], strides = [1, 1]} : vector<1x128xf32> to vector<1x32xf32>
    %126 = vector.extract_strided_slice %124 {offsets = [0, 32], sizes = [1, 32], strides = [1, 1]} : vector<1x128xf32> to vector<1x32xf32>
    %127 = vector.extract_strided_slice %124 {offsets = [0, 64], sizes = [1, 32], strides = [1, 1]} : vector<1x128xf32> to vector<1x32xf32>
    %128 = vector.extract_strided_slice %124 {offsets = [0, 96], sizes = [1, 32], strides = [1, 1]} : vector<1x128xf32> to vector<1x32xf32>
    %129 = arith.mulf %126, %108 : vector<1x32xf32>
    %130 = arith.mulf %125, %127 : vector<1x32xf32>
    %131 = arith.addf %129, %130 : vector<1x32xf32>
    %132 = math.tanh %131 : vector<1x32xf32>
    %133 = arith.mulf %128, %132 : vector<1x32xf32>
    %c5_i32 = arith.constant 5 : i32
    %c1_i32_45 = arith.constant 1 : i32
    %134 = arith.muli %c5_i32, %c1_i32_45 : i32
    %135 = arith.index_cast %134 : i32 to index
    %c0_46 = arith.constant 0 : index
    %136 = vector.load %arg10[%135, %c0_46] : memref<8x128xf32, #tpu.memory_space<vmem>>, vector<1x128xf32>
    %cst_47 = arith.constant dense<0.000000e+00> : vector<1x128xf32>
    %137 = tpu.matmul %133, %10, %cst_47 {dimension_numbers = #tpu.dot_dimension_numbers<[1], [0], [0], [1], [0, 0, 1, 1], [], []>} : vector<1x32xf32>, vector<32x128xf32>, vector<1x128xf32> -> vector<1x128xf32>
    %138 = arith.addf %136, %137 : vector<1x128xf32>
    %cst_48 = arith.constant 5.000000e-01 : f32
    %139 = vector.broadcast %cst_48 : f32 to vector<1x128xf32>
    %140 = arith.mulf %138, %139 : vector<1x128xf32>
    %141 = arith.select %16, %138, %140 : vector<1x128xi1>, vector<1x128xf32>
    %142 = math.tanh %141 : vector<1x128xf32>
    %cst_49 = arith.constant 1.000000e+00 : f32
    %143 = vector.broadcast %cst_49 : f32 to vector<1x128xf32>
    %144 = arith.addf %142, %143 : vector<1x128xf32>
    %cst_50 = arith.constant 5.000000e-01 : f32
    %145 = vector.broadcast %cst_50 : f32 to vector<1x128xf32>
    %146 = arith.mulf %145, %144 : vector<1x128xf32>
    %147 = arith.select %16, %142, %146 : vector<1x128xi1>, vector<1x128xf32>
    %148 = vector.extract_strided_slice %147 {offsets = [0, 0], sizes = [1, 32], strides = [1, 1]} : vector<1x128xf32> to vector<1x32xf32>
    %149 = vector.extract_strided_slice %147 {offsets = [0, 32], sizes = [1, 32], strides = [1, 1]} : vector<1x128xf32> to vector<1x32xf32>
    %150 = vector.extract_strided_slice %147 {offsets = [0, 64], sizes = [1, 32], strides = [1, 1]} : vector<1x128xf32> to vector<1x32xf32>
    %151 = vector.extract_strided_slice %147 {offsets = [0, 96], sizes = [1, 32], strides = [1, 1]} : vector<1x128xf32> to vector<1x32xf32>
    %152 = arith.mulf %149, %131 : vector<1x32xf32>
    %153 = arith.mulf %148, %150 : vector<1x32xf32>
    %154 = arith.addf %152, %153 : vector<1x32xf32>
    %155 = math.tanh %154 : vector<1x32xf32>
    %156 = arith.mulf %151, %155 : vector<1x32xf32>
    %c6_i32 = arith.constant 6 : i32
    %c1_i32_51 = arith.constant 1 : i32
    %157 = arith.muli %c6_i32, %c1_i32_51 : i32
    %158 = arith.index_cast %157 : i32 to index
    %c0_52 = arith.constant 0 : index
    %159 = vector.load %arg10[%158, %c0_52] : memref<8x128xf32, #tpu.memory_space<vmem>>, vector<1x128xf32>
    %cst_53 = arith.constant dense<0.000000e+00> : vector<1x128xf32>
    %160 = tpu.matmul %156, %10, %cst_53 {dimension_numbers = #tpu.dot_dimension_numbers<[1], [0], [0], [1], [0, 0, 1, 1], [], []>} : vector<1x32xf32>, vector<32x128xf32>, vector<1x128xf32> -> vector<1x128xf32>
    %161 = arith.addf %159, %160 : vector<1x128xf32>
    %cst_54 = arith.constant 5.000000e-01 : f32
    %162 = vector.broadcast %cst_54 : f32 to vector<1x128xf32>
    %163 = arith.mulf %161, %162 : vector<1x128xf32>
    %164 = arith.select %16, %161, %163 : vector<1x128xi1>, vector<1x128xf32>
    %165 = math.tanh %164 : vector<1x128xf32>
    %cst_55 = arith.constant 1.000000e+00 : f32
    %166 = vector.broadcast %cst_55 : f32 to vector<1x128xf32>
    %167 = arith.addf %165, %166 : vector<1x128xf32>
    %cst_56 = arith.constant 5.000000e-01 : f32
    %168 = vector.broadcast %cst_56 : f32 to vector<1x128xf32>
    %169 = arith.mulf %168, %167 : vector<1x128xf32>
    %170 = arith.select %16, %165, %169 : vector<1x128xi1>, vector<1x128xf32>
    %171 = vector.extract_strided_slice %170 {offsets = [0, 0], sizes = [1, 32], strides = [1, 1]} : vector<1x128xf32> to vector<1x32xf32>
    %172 = vector.extract_strided_slice %170 {offsets = [0, 32], sizes = [1, 32], strides = [1, 1]} : vector<1x128xf32> to vector<1x32xf32>
    %173 = vector.extract_strided_slice %170 {offsets = [0, 64], sizes = [1, 32], strides = [1, 1]} : vector<1x128xf32> to vector<1x32xf32>
    %174 = vector.extract_strided_slice %170 {offsets = [0, 96], sizes = [1, 32], strides = [1, 1]} : vector<1x128xf32> to vector<1x32xf32>
    %175 = arith.mulf %172, %154 : vector<1x32xf32>
    %176 = arith.mulf %171, %173 : vector<1x32xf32>
    %177 = arith.addf %175, %176 : vector<1x32xf32>
    %178 = math.tanh %177 : vector<1x32xf32>
    %179 = arith.mulf %174, %178 : vector<1x32xf32>
    %c7_i32 = arith.constant 7 : i32
    %c1_i32_57 = arith.constant 1 : i32
    %180 = arith.muli %c7_i32, %c1_i32_57 : i32
    %181 = arith.index_cast %180 : i32 to index
    %c0_58 = arith.constant 0 : index
    %182 = vector.load %arg10[%181, %c0_58] : memref<8x128xf32, #tpu.memory_space<vmem>>, vector<1x128xf32>
    %cst_59 = arith.constant dense<0.000000e+00> : vector<1x128xf32>
    %183 = tpu.matmul %179, %10, %cst_59 {dimension_numbers = #tpu.dot_dimension_numbers<[1], [0], [0], [1], [0, 0, 1, 1], [], []>} : vector<1x32xf32>, vector<32x128xf32>, vector<1x128xf32> -> vector<1x128xf32>
    %184 = arith.addf %182, %183 : vector<1x128xf32>
    %cst_60 = arith.constant 5.000000e-01 : f32
    %185 = vector.broadcast %cst_60 : f32 to vector<1x128xf32>
    %186 = arith.mulf %184, %185 : vector<1x128xf32>
    %187 = arith.select %16, %184, %186 : vector<1x128xi1>, vector<1x128xf32>
    %188 = math.tanh %187 : vector<1x128xf32>
    %cst_61 = arith.constant 1.000000e+00 : f32
    %189 = vector.broadcast %cst_61 : f32 to vector<1x128xf32>
    %190 = arith.addf %188, %189 : vector<1x128xf32>
    %cst_62 = arith.constant 5.000000e-01 : f32
    %191 = vector.broadcast %cst_62 : f32 to vector<1x128xf32>
    %192 = arith.mulf %191, %190 : vector<1x128xf32>
    %193 = arith.select %16, %188, %192 : vector<1x128xi1>, vector<1x128xf32>
    %194 = vector.extract_strided_slice %193 {offsets = [0, 0], sizes = [1, 32], strides = [1, 1]} : vector<1x128xf32> to vector<1x32xf32>
    %195 = vector.extract_strided_slice %193 {offsets = [0, 32], sizes = [1, 32], strides = [1, 1]} : vector<1x128xf32> to vector<1x32xf32>
    %196 = vector.extract_strided_slice %193 {offsets = [0, 64], sizes = [1, 32], strides = [1, 1]} : vector<1x128xf32> to vector<1x32xf32>
    %197 = vector.extract_strided_slice %193 {offsets = [0, 96], sizes = [1, 32], strides = [1, 1]} : vector<1x128xf32> to vector<1x32xf32>
    %198 = arith.mulf %195, %177 : vector<1x32xf32>
    %199 = arith.mulf %194, %196 : vector<1x32xf32>
    %200 = arith.addf %198, %199 : vector<1x32xf32>
    %201 = math.tanh %200 : vector<1x32xf32>
    %202 = arith.mulf %197, %201 : vector<1x32xf32>
    %c8_i32 = arith.constant 8 : i32
    %c0_63 = arith.constant 0 : index
    %c0_64 = arith.constant 0 : index
    %203 = vector.load %arg11[%c0_63, %c0_64] : memref<1x32xf32, #tpu.memory_space<vmem>>, vector<1x32xf32>
    tpu.vector_store %arg11[%c0_63, %c0_64], %202 {strides = array<i32>} : memref<1x32xf32, #tpu.memory_space<vmem>>, vector<1x32xf32>,
    %c0_65 = arith.constant 0 : index
    %c0_66 = arith.constant 0 : index
    %204 = vector.load %arg12[%c0_65, %c0_66] : memref<1x32xf32, #tpu.memory_space<vmem>>, vector<1x32xf32>
    tpu.vector_store %arg12[%c0_65, %c0_66], %200 {strides = array<i32>} : memref<1x32xf32, #tpu.memory_space<vmem>>, vector<1x32xf32>,
    %c1_i32_67 = arith.constant 1 : i32
    %205 = arith.cmpi eq, %arg0, %c1_i32_67 : i32
    %206 = arith.extui %205 : i1 to i32
    %c0_i32_68 = arith.constant 0 : i32
    %207 = arith.cmpi ne, %206, %c0_i32_68 : i32
    scf.if %207 {
      %c0_69 = arith.constant 0 : index
      %c0_70 = arith.constant 0 : index
      %208 = vector.load %arg7[%c0_69, %c0_70] : memref<32x16xf32, #tpu.memory_space<vmem>>, vector<32x16xf32>
      %cst_71 = arith.constant dense<0.000000e+00> : vector<1x16xf32>
      %209 = tpu.matmul %202, %208, %cst_71 {dimension_numbers = #tpu.dot_dimension_numbers<[1], [0], [0], [1], [0, 0, 1, 1], [], []>} : vector<1x32xf32>, vector<32x16xf32>, vector<1x16xf32> -> vector<1x16xf32>
      %c0_72 = arith.constant 0 : index
      %c0_73 = arith.constant 0 : index
      %210 = vector.load %arg8[%c0_72, %c0_73] : memref<1x16xf32, #tpu.memory_space<vmem>>, vector<1x16xf32>
      %211 = arith.addf %209, %210 : vector<1x16xf32>
      %cst_74 = arith.constant dense<0xFF800000> : vector<1xf32>
      %212 = vector.multi_reduction <maximumf>, %211, %cst_74 [1] : vector<1x16xf32> to vector<1xf32>
      %213 = vector.shape_cast %212 : vector<1xf32> to vector<1x1xf32>
      %214 = vector.broadcast %213 : vector<1x1xf32> to vector<1x16xf32>
      %215 = arith.subf %211, %214 : vector<1x16xf32>
      %216 = math.exp %215 : vector<1x16xf32>
      %cst_75 = arith.constant dense<0.000000e+00> : vector<1xf32>
      %217 = vector.multi_reduction <add>, %216, %cst_75 [1] : vector<1x16xf32> to vector<1xf32>
      %218 = vector.shape_cast %217 : vector<1xf32> to vector<1x1xf32>
      %219 = math.log %218 : vector<1x1xf32>
      %220 = vector.broadcast %219 : vector<1x1xf32> to vector<1x16xf32>
      %221 = arith.subf %215, %220 : vector<1x16xf32>
      %c0_76 = arith.constant 0 : index
      %c0_77 = arith.constant 0 : index
      %222 = vector.load %arg9[%c0_76, %c0_77] : memref<1x16xf32, #tpu.memory_space<vmem>>, vector<1x16xf32>
      tpu.vector_store %arg9[%c0_76, %c0_77], %221 {strides = array<i32>} : memref<1x16xf32, #tpu.memory_space<vmem>>, vector<1x16xf32>,
    } else {
    }
    return
  }
  func.func @transform_0(%arg0: i32) -> (i32, i32) {
    %c0_i32 = arith.constant 0 : i32
    %c0_i32_0 = arith.constant 0 : i32
    return %arg0, %c0_i32 : i32, i32
  }
  func.func @transform_1(%arg0: i32) -> (i32, i32) {
    %c0_i32 = arith.constant 0 : i32
    %c0_i32_0 = arith.constant 0 : i32
    %c0_i32_1 = arith.constant 0 : i32
    return %c0_i32, %c0_i32_0 : i32, i32
  }
  func.func @transform_2(%arg0: i32) -> (i32, i32) {
    %c0_i32 = arith.constant 0 : i32
    %c0_i32_0 = arith.constant 0 : i32
    %c0_i32_1 = arith.constant 0 : i32
    return %c0_i32, %c0_i32_0 : i32, i32
  }
  func.func @transform_3(%arg0: i32) -> (i32, i32) {
    %c0_i32 = arith.constant 0 : i32
    %c0_i32_0 = arith.constant 0 : i32
    %c0_i32_1 = arith.constant 0 : i32
    return %c0_i32, %c0_i32_0 : i32, i32
  }
  func.func @transform_4(%arg0: i32) -> (i32, i32) {
    %c0_i32 = arith.constant 0 : i32
    %c0_i32_0 = arith.constant 0 : i32
    %c0_i32_1 = arith.constant 0 : i32
    return %c0_i32, %c0_i32_0 : i32, i32
  }
  func.func @transform_5(%arg0: i32) -> (i32, i32) {
    %c0_i32 = arith.constant 0 : i32
    %c0_i32_0 = arith.constant 0 : i32
    %c0_i32_1 = arith.constant 0 : i32
    return %c0_i32, %c0_i32_0 : i32, i32
  }
  func.func @transform_6(%arg0: i32) -> (i32, i32) {
    %c0_i32 = arith.constant 0 : i32
    %c0_i32_0 = arith.constant 0 : i32
    %c0_i32_1 = arith.constant 0 : i32
    return %c0_i32, %c0_i32_0 : i32, i32
  }
  func.func @transform_7(%arg0: i32) -> (i32, i32) {
    %c0_i32 = arith.constant 0 : i32
    %c0_i32_0 = arith.constant 0 : i32
    %c0_i32_1 = arith.constant 0 : i32
    return %c0_i32, %c0_i32_0 : i32, i32
  }
  func.func @transform_8(%arg0: i32) -> (i32, i32) {
    %c0_i32 = arith.constant 0 : i32
    %c0_i32_0 = arith.constant 0 : i32
    %c0_i32_1 = arith.constant 0 : i32
    return %c0_i32, %c0_i32_0 : i32, i32
  }
}

</mosaic_0001>

<bundles_post_ra>
// kernel: lstm_forward.1
= control target key start
LH: loop header
LB: loop body
LE: loop exit
PB: predicated region body
PF: predicated region fallthrough
CT: control target
= control target key end

     0   :  { %13 = vsyncpa [#allocation6], 0  ;;  %s2023_s0 = inlined_call_operand.vmem [shape: f32[16,32], index: 0, kind: input, shape index: {}]   ;;  %s2024_s1 = inlined_call_operand.vmem [shape: f32[1,32], index: 1, kind: input, shape index: {}]   ;;  %s2025_s2 = inlined_call_operand.vmem [shape: f32[1,32], index: 2, kind: input, shape index: {}]   ;;  %s2026_s3 = inlined_call_operand.vmem [shape: f32[32,128], index: 3, kind: input, shape index: {}]   ;;  %s2027_s4 = inlined_call_operand.hbm [shape: f32[32,128], index: 4, kind: input, shape index: {}]   ;;  %s2028_s5 = inlined_call_operand.vmem [shape: f32[1,128], index: 5, kind: input, shape index: {}]   ;;  %s2029_s6 = inlined_call_operand.vmem [shape: f32[32,16], index: 6, kind: input, shape index: {}]   ;;  %s2030_s7 = inlined_call_operand.vmem [shape: f32[1,16], index: 7, kind: input, shape index: {}]   ;;  %s2031_s8 = inlined_call_operand.hbm [shape: f32[1,16], index: 8, kind: output, shape index: {}]  }
   0x1   :  { %14 = vsyncpa [#allocation7], 0  ;;  %s1759_s27 = smov 0  }
   0x2 LB: > { %s1765_s28 = sadd.s32 4294967295, %s1701_s27   ;;  %p1382_p0 = scmp.ge.s32.totalorder %s1701_s27, 1  ;;  %s1701_s27 = sphi %s1759_s27, %s20_s27  }
   0x3   : > { %p219_p1 = scmp.lt.s32.totalorder %s1701_s27, 3  ;;  %s1703_s29 = smov [#allocation5]  }
   0x4   : > { %s240_s30 = sshll.u32 %s1703_s29, 4  ;;  %p1578_p4 = scmp.eq.s32.totalorder %s1765_s28, 0  ;;  %s241_s30 = int_to_ptr.vmem [resolvable:$true] %s240_s30 }
   0x5   : > { %p1770_p3 = pnand %p1382_p0, %p219_p1  ;;  %s1648_s10 = scalar_lea.vmem %s241_s30, 512 }
   0x6   : > { %p1649_p8 = scmp.ne.s32.totalorder %s241_s30, %s1648_s10  ;;  %p1656_p11 = scmp.lt.s32.totalorder %s241_s30, %s241_s30 }
   0x7   : > { %p1574_p5 = pneg %p1770_p3  ;;  %p1657_p12 = scmp.lt.s32.totalorder %s1648_s10, %s1648_s10 }
   0x9   : > { %p1575_p6 = pnand %p1578_p4, %p1574_p5  ;;  %p1658_p13 = por %p1657_p12, %p1656_p11 }
   0xb   : > { %p1639_p7 = pneg %p1575_p6 }
   0xd   : > { %p1651_p9 = pnand %p1649_p8, %p1639_p7 }
   0xf   : > { %p1652_p10 = pneg %p1651_p9 }
  0x11   : > { %p1659_p2 = pnand %p1658_p13, %p1652_p10 }
  0x13   : > { %1662 = shalt.err (!%p1659_p2)
}
  0x14   : > { %s1704_s11 = smov 128   ;;  %s1705_s12 = smov 8  }
  0x15   : > { %1577 = dma.hbm_to_vmem [thread:$0]  (!%p1575_p6), %s2027_s4, 512, %s241_s30, [#allocation6], %s1704_s11, %s1704_s11, %s1705_s12  }
  0x16   : > { %272 = sbr.rel (%p1770_p3) target bundleno = 6169 (0x1819), region = 52 }
  0x1b   : > { %1692 = dma.done.wait (%p1578_p4), [#allocation6], 512  }
  0x1c   : > { %1694 = vsyncadd (%p1578_p4), [#allocation6], 4294966784  ;;  %p300_p0 = scmp.lt.s32.totalorder %s1765_s28, 1  ;;  %p2033_p1 = scmp.ne.s32.totalorder %s1765_s28, 0 }
  0x1e   : > { %s301_s15 = scalar_select %p300_p0, %s1765_s28, 1 }
  0x1f   : > { %307 = sbr.rel (%p2033_p1) target bundleno = 39 (0x27), region = 60 }
  0x20   : > { %s1387_s16 = sshll.u32 %s301_s15, 3 }
  0x21   : > { %s303_s19 = scalar_lea.vmem %s2023_s0, %s1387_s16 }
  0x24   : > { %v308_v0 = vld [vmem:[%s2024_s1] sm:$0x1]  ;;  %vm309_vm0 = vcmask 253952  }
  0x25   : > { %v311_v1 = vld [vmem:[%s2025_s2] sm:$0x1]  ;;  %310 = vst.msk [vmem:[#allocation3] sm:$0x1] %vm309_vm0, %v308_v0 }
  0x26   : > { %312 = vst.msk [vmem:[#allocation4] sm:$0x1] %vm309_vm0, %v311_v1 }
  0x27 PF: > { %v317_v2 = vld [vmem:[%s2026_s3 + $0x18] sm:$0xff]  ;;  %v1706_v3 = vmov 0.0   ;;  %v316_v4 = vld [vmem:[%s2026_s3 + $0x10] sm:$0xff]  ;;  %vm1707_vm1 = vmmov 0   ;;  %v1810_v5 = vld [vmem:[#allocation5 + $0x18] sm:$0xff]  ;;  %vm325_vm2 = vcmask 261120   ;;  %v404_v16 = vlaneseq }
  0x28   : > { %1456 = vmatprep.subr.mxu0 %v1706_v3  ;;  %1464 = vmatprep.mubr.msk.f32.mxu0 %vm1707_vm1, %v1706_v3  ;;  %v1813_v6 = vld [vmem:[#allocation5 + $0x10] sm:$0xff]  ;;  %v315_v7 = vld [vmem:[%s2026_s3 + $0x8] sm:$0xff]  ;;  %v1821_v8 = vld [vmem:[#allocation5 + $0x8] sm:$0xff]  ;;  %s1708_s14 = smov 64   ;;  %s1709_s15 = smov 32   ;;  %vm1221_vm6 = vcmask 253952  }
  0x29   : > { %1457 = vmatpush3.msra.mxu0 %v317_v2  ;;  %1467 = vmatprep.subr.mxu1 %v1706_v3  ;;  %v314_v9 = vld [vmem:[%s2026_s3] sm:$0xff]  ;;  %v1829_v11 = vld [vmem:[#allocation5] sm:$0xff]  ;;  %v405_v20 = vand.u32 127, %v404_v16  ;;  %s1710_s16 = smov 96   ;;  %p1400_p2 = scmp.ne.s32.totalorder %s1765_s28, 1 }
  0x2a   : > { %1458 = vmatprep.subr.mxu0 %v1706_v3  ;;  %1468 = vmatpush3.msra.mxu1 %v1810_v5  ;;  %v313_v10 = vld [vmem:[%s303_s19] sm:$0xff] }
  0x2b   : > { %1459 = vmatpush3.msra.mxu0 %v316_v4  ;;  %1469 = vmatprep.subr.mxu1 %v1706_v3  ;;  %v1389_v13 = vld [vmem:[%s2028_s5] ss:$0 sm:$0xff]  ;;  %vm406_vm3 = vcmp.ge.s32.totalorder %v405_v20, 64  ;;  %vm407_vm4 = vcmp.lt.s32.totalorder %v405_v20, 96 }
  0x2c   : > { %1460 = vmatprep.subr.mxu0 %v1706_v3  ;;  %1470 = vmatpush3.msra.mxu1 %v1813_v6  ;;  %v409_v12 = vld [vmem:[#allocation3] sm:$0x1]  ;;  %vm1864_vm5 = vmand %vm406_vm3, %vm407_vm4 }
  0x2d   : > { %1461 = vmatpush3.msra.mxu0 %v315_v7  ;;  %1471 = vmatprep.subr.mxu1 %v1706_v3  ;;  %v1392_v30 = vld [vmem:[#allocation4] ss:$0 sm:$0xff] }
  0x2e   : > { %1462 = vmatprep.subr.mxu0 %v1706_v3  ;;  %1472 = vmatpush3.msra.mxu1 %v1821_v8 }
  0x2f   : > { %1463 = vmatpush3.msra.mxu0 %v314_v9  ;;  %1473 = vmatprep.subr.mxu1 %v1706_v3 }
  0x30   : > { %1465 = vmatmul.mubr.msk.f32.vlgmr.msra.gmra.mxu0 %vm325_vm2, %v313_v10  ;;  %1474 = vmatpush3.msra.mxu1 %v1829_v11 }
  0x31   : > { %1475 = vmatprep.mubr.msk.f32.mxu1 %vm1707_vm1, %v1706_v3  ;;  %1478 = vmatprep.subr.mxu0 %v1706_v3 }
  0x32   : > { %1476 = vmatmul.mubr.msk.f32.vlgmr.msra.gmra.mxu1 %vm325_vm2, %v409_v12  ;;  %1479 = vmatpush3.msra.mxu0 %v1810_v5 }
  0x33   : > { %1480 = vmatprep.subr.mxu0 %v1706_v3  ;;  %1486 = vmatprep.mubr.msk.f32.mxu0 %vm1707_vm1, %v1706_v3 }
  0x34   : > { %1481 = vmatpush3.msra.mxu0 %v1813_v6  ;;  %1489 = vmatprep.subr.mxu1 %v1706_v3 }
  0x35   : > { %1482 = vmatprep.subr.mxu0 %v1706_v3  ;;  %1490 = vmatpush3.msra.mxu1 %v1810_v5 }
  0x36   : > { %1483 = vmatpush3.msra.mxu0 %v1821_v8  ;;  %1491 = vmatprep.subr.mxu1 %v1706_v3 }
  0x37   : > { %1484 = vmatprep.subr.mxu0 %v1706_v3  ;;  %1492 = vmatpush3.msra.mxu1 %v1813_v6 }
  0x38   : > { %1485 = vmatpush3.msra.mxu0 %v1829_v11  ;;  %1493 = vmatprep.subr.mxu1 %v1706_v3 }
  0x39   : > { %1494 = vmatpush3.msra.mxu1 %v1821_v8  ;;  %1497 = vmatprep.mubr.msk.f32.mxu1 %vm1707_vm1, %v1706_v3 }
  0x3a   : > { %1495 = vmatprep.subr.mxu1 %v1706_v3  ;;  %1500 = vmatprep.subr.mxu0 %v1706_v3 }
  0x3b   : > { %1496 = vmatpush3.msra.mxu1 %v1829_v11 }
  0x3c   : > { %1511 = vmatprep.subr.mxu1 %v1706_v3 }
  0xf0   : > { %v395_v14 = vpop.f32.mrf.mxu0 }
  0xf1   : > { %v396_v15 = vadd.f32 %v1389_v13, %v395_v14 }
  0xf2   : > { %v1466_v17 = vpop.f32.mrf.mxu0  ;;  %v481_v18 = vpop.f32.mrf.mxu1 }
  0xf3   : > { %399 = vst [vmem:[#allocation2] sm:$0xff] %v396_v15 }
  0xf4   : > { %v1477_v19 = vpop.f32.mrf.mxu1 }
  0xfa   : > { %v411_v21 = vld [vmem:[#allocation2] sm:$0x1]  ;;  %v517_v41 = vld [vmem:[#allocation2 + $0x1] sm:$0x1]  ;;  %v617_v60 = vld [vmem:[#allocation2 + $0x2] sm:$0x1] }
  0xfb   : > { %v485_v22 = vadd.f32 %v481_v18, %v411_v21  ;;  %v717_v20 = vld [vmem:[#allocation2 + $0x3] sm:$0x1] }
  0xfd   : > { %v486_v24 = vmul.f32 0.5, %v485_v22 }
  0xff   : > { %v487_v25 = vsel %vm1864_vm5, %v485_v22, %v486_v24 }
 0x100   : > { %1601 = vtanh.f32 %v487_v25 }
 0x10d   : > { %v1602_v26 = vpop.eup %1601 }
 0x10e   : > { %v489_v27 = vadd.f32 1.0, %v1602_v26 }
 0x110   : > { %v490_v28 = vmul.f32 0.5, %v489_v27 }
 0x112   : > { %v491_v29 = vsel %vm1864_vm5, %v1602_v26, %v490_v28 }
 0x113   : > { %502 = vrot.lane.b32.xlu0 %v491_v29, %s1708_s14 }
 0x117   : > { %497 = vrot.lane.b32.xlu0 %v1392_v30, %s1709_s15 }
 0x185   : > { %v503_v31 = vpop.permute.xlu0 %502 }
 0x186   : > { %v505_v32 = vmul.f32 %v503_v31, %v491_v29 }
 0x188   : > { %507 = vrot.lane.b32.xlu1 %v505_v32, %s1709_s15 }
 0x189   : > { %v498_v33 = vpop.permute.xlu0 %497 }
 0x18a   : > { %v500_v34 = vmul.f32 %v498_v33, %v491_v29 }
 0x1fa   : > { %v508_v35 = vpop.permute.xlu1 %507 }
 0x1fb   : > { %v510_v36 = vadd.f32 %v508_v35, %v500_v34 }
 0x1fd   : > { %1603 = vtanh.f32 %v510_v36 }
 0x20a   : > { %v1604_v37 = vpop.eup %1603 }
 0x20b   : > { %513 = vrot.lane.b32.xlu1 %v1604_v37, %s1708_s14 }
 0x27d   : > { %v514_v38 = vpop.permute.xlu1 %513 }
 0x27e   : > { %v516_v39 = vmul.f32 %v514_v38, %v491_v29 }
 0x280   : > { %519 = vrot.lane.b32.xlu0 %v516_v39, %s1709_s15 }
 0x2f2   : > { %v520_v40 = vpop.permute.xlu0 %519 }
 0x2f3   : > { %1487 = vmatmul.mubr.msk.f32.vlgmr.msra.gmra.mxu0 %vm325_vm2, %v520_v40  ;;  %v817_v40 = vld [vmem:[#allocation2 + $0x4] sm:$0x1] }
 0x2f4   : > { %1501 = vmatpush3.msra.mxu0 %v1810_v5  ;;  %1508 = vmatprep.mubr.msk.f32.mxu0 %vm1707_vm1, %v1706_v3 }
 0x2f5   : > { %1502 = vmatprep.subr.mxu0 %v1706_v3 }
 0x2f6   : > { %1503 = vmatpush3.msra.mxu0 %v1813_v6 }
 0x2f7   : > { %1504 = vmatprep.subr.mxu0 %v1706_v3 }
 0x2f8   : > { %1505 = vmatpush3.msra.mxu0 %v1821_v8 }
 0x2f9   : > { %1506 = vmatprep.subr.mxu0 %v1706_v3 }
 0x2fa   : > { %1507 = vmatpush3.msra.mxu0 %v1829_v11 }
 0x2fb   : > { %1522 = vmatprep.subr.mxu0 %v1706_v3 }
 0x3b3   : > { %v589_v42 = vpop.f32.mrf.mxu0 }
 0x3b4   : > { %v593_v43 = vadd.f32 %v589_v42, %v517_v41 }
 0x3b5   : > { %v1488_v44 = vpop.f32.mrf.mxu0 }
 0x3b6   : > { %v594_v45 = vmul.f32 0.5, %v593_v43 }
 0x3b8   : > { %v595_v46 = vsel %vm1864_vm5, %v593_v43, %v594_v45 }
 0x3b9   : > { %1605 = vtanh.f32 %v595_v46 }
 0x3c6   : > { %v1606_v47 = vpop.eup %1605 }
 0x3c7   : > { %v597_v48 = vadd.f32 1.0, %v1606_v47 }
 0x3c9   : > { %v598_v49 = vmul.f32 0.5, %v597_v48 }
 0x3cb   : > { %v599_v50 = vsel %vm1864_vm5, %v1606_v47, %v598_v49 }
 0x3cc   : > { %602 = vrot.lane.b32.xlu1 %v599_v50, %s1708_s14  ;;  %v600_v53 = vmul.f32 %v599_v50, %v510_v36 }
 0x43e   : > { %v603_v51 = vpop.permute.xlu1 %602 }
 0x43f   : > { %v605_v52 = vmul.f32 %v603_v51, %v599_v50 }
 0x441   : > { %607 = vrot.lane.b32.xlu0 %v605_v52, %s1709_s15 }
 0x4b3   : > { %v608_v54 = vpop.permute.xlu0 %607 }
 0x4b4   : > { %v610_v55 = vadd.f32 %v608_v54, %v600_v53 }
 0x4b6   : > { %1607 = vtanh.f32 %v610_v55 }
 0x4c3   : > { %v1608_v56 = vpop.eup %1607 }
 0x4c4   : > { %613 = vrot.lane.b32.xlu1 %v1608_v56, %s1708_s14 }
 0x536   : > { %v614_v57 = vpop.permute.xlu1 %613 }
 0x537   : > { %v616_v58 = vmul.f32 %v614_v57, %v599_v50 }
 0x539   : > { %619 = vrot.lane.b32.xlu0 %v616_v58, %s1709_s15 }
 0x5ab   : > { %v620_v59 = vpop.permute.xlu0 %619 }
 0x5ac   : > { %1498 = vmatmul.mubr.msk.f32.vlgmr.msra.gmra.mxu1 %vm325_vm2, %v620_v59  ;;  %v917_v59 = vld [vmem:[#allocation2 + $0x5] sm:$0x1] }
 0x5ad   : > { %1512 = vmatpush3.msra.mxu1 %v1810_v5  ;;  %1519 = vmatprep.mubr.msk.f32.mxu1 %vm1707_vm1, %v1706_v3 }
 0x5ae   : > { %1513 = vmatprep.subr.mxu1 %v1706_v3 }
 0x5af   : > { %1514 = vmatpush3.msra.mxu1 %v1813_v6 }
 0x5b0   : > { %1515 = vmatprep.subr.mxu1 %v1706_v3 }
 0x5b1   : > { %1516 = vmatpush3.msra.mxu1 %v1821_v8 }
 0x5b2   : > { %1517 = vmatprep.subr.mxu1 %v1706_v3 }
 0x5b3   : > { %1518 = vmatpush3.msra.mxu1 %v1829_v11 }
 0x5b4   : > { %1533 = vmatprep.subr.mxu1 %v1706_v3 }
 0x66c   : > { %v689_v61 = vpop.f32.mrf.mxu1 }
 0x66d   : > { %v693_v62 = vadd.f32 %v689_v61, %v617_v60 }
 0x66e   : > { %v1499_v63 = vpop.f32.mrf.mxu1 }
 0x66f   : > { %v694_v0 = vmul.f32 0.5, %v693_v62 }
 0x671   : > { %v695_v1 = vsel %vm1864_vm5, %v693_v62, %v694_v0 }
 0x672   : > { %1609 = vtanh.f32 %v695_v1 }
 0x67f   : > { %v1610_v2 = vpop.eup %1609 }
 0x680   : > { %v697_v4 = vadd.f32 1.0, %v1610_v2 }
 0x682   : > { %v698_v7 = vmul.f32 0.5, %v697_v4 }
 0x684   : > { %v699_v9 = vsel %vm1864_vm5, %v1610_v2, %v698_v7 }
 0x685   : > { %702 = vrot.lane.b32.xlu1 %v699_v9, %s1708_s14  ;;  %v700_v13 = vmul.f32 %v699_v9, %v610_v55 }
 0x6f7   : > { %v703_v10 = vpop.permute.xlu1 %702 }
 0x6f8   : > { %v705_v12 = vmul.f32 %v703_v10, %v699_v9 }
 0x6fa   : > { %707 = vrot.lane.b32.xlu0 %v705_v12, %s1709_s15 }
 0x76c   : > { %v708_v14 = vpop.permute.xlu0 %707 }
 0x76d   : > { %v710_v15 = vadd.f32 %v708_v14, %v700_v13  ;;  %v1017_v14 = vld [vmem:[#allocation2 + $0x6] sm:$0x1] }
 0x76f   : > { %1611 = vtanh.f32 %v710_v15 }
 0x77c   : > { %v1612_v16 = vpop.eup %1611 }
 0x77d   : > { %713 = vrot.lane.b32.xlu1 %v1612_v16, %s1708_s14 }
 0x7ef   : > { %v714_v17 = vpop.permute.xlu1 %713 }
 0x7f0   : > { %v716_v18 = vmul.f32 %v714_v17, %v699_v9 }
 0x7f2   : > { %719 = vrot.lane.b32.xlu0 %v716_v18, %s1709_s15 }
 0x864   : > { %v720_v19 = vpop.permute.xlu0 %719 }
 0x865   : > { %1509 = vmatmul.mubr.msk.f32.vlgmr.msra.gmra.mxu0 %vm325_vm2, %v720_v19 }
 0x866   : > { %1523 = vmatpush3.msra.mxu0 %v1810_v5  ;;  %1530 = vmatprep.mubr.msk.f32.mxu0 %vm1707_vm1, %v1706_v3 }
 0x867   : > { %1524 = vmatprep.subr.mxu0 %v1706_v3 }
 0x868   : > { %1525 = vmatpush3.msra.mxu0 %v1813_v6 }
 0x869   : > { %1526 = vmatprep.subr.mxu0 %v1706_v3 }
 0x86a   : > { %1527 = vmatpush3.msra.mxu0 %v1821_v8 }
 0x86b   : > { %1528 = vmatprep.subr.mxu0 %v1706_v3 }
 0x86c   : > { %1529 = vmatpush3.msra.mxu0 %v1829_v11 }
 0x86d   : > { %1544 = vmatprep.subr.mxu0 %v1706_v3 }
 0x925   : > { %v789_v21 = vpop.f32.mrf.mxu0 }
 0x926   : > { %v793_v22 = vadd.f32 %v789_v21, %v717_v20 }
 0x927   : > { %v1510_v24 = vpop.f32.mrf.mxu0 }
 0x928   : > { %v794_v25 = vmul.f32 0.5, %v793_v22 }
 0x92a   : > { %v795_v26 = vsel %vm1864_vm5, %v793_v22, %v794_v25 }
 0x92b   : > { %1613 = vtanh.f32 %v795_v26 }
 0x938   : > { %v1614_v27 = vpop.eup %1613 }
 0x939   : > { %v797_v28 = vadd.f32 1.0, %v1614_v27 }
 0x93b   : > { %v798_v29 = vmul.f32 0.5, %v797_v28 }
 0x93d   : > { %v799_v30 = vsel %vm1864_vm5, %v1614_v27, %v798_v29 }
 0x93e   : > { %802 = vrot.lane.b32.xlu1 %v799_v30, %s1708_s14  ;;  %v800_v33 = vmul.f32 %v799_v30, %v710_v15 }
 0x9b0   : > { %v803_v31 = vpop.permute.xlu1 %802 }
 0x9b1   : > { %v805_v32 = vmul.f32 %v803_v31, %v799_v30 }
 0x9b3   : > { %807 = vrot.lane.b32.xlu0 %v805_v32, %s1709_s15 }
 0xa25   : > { %v808_v34 = vpop.permute.xlu0 %807 }
 0xa26   : > { %v810_v35 = vadd.f32 %v808_v34, %v800_v33  ;;  %v1117_v34 = vld [vmem:[#allocation2 + $0x7] sm:$0x1] }
 0xa28   : > { %1615 = vtanh.f32 %v810_v35 }
 0xa35   : > { %v1616_v36 = vpop.eup %1615 }
 0xa36   : > { %813 = vrot.lane.b32.xlu1 %v1616_v36, %s1708_s14 }
 0xaa8   : > { %v814_v37 = vpop.permute.xlu1 %813 }
 0xaa9   : > { %v816_v38 = vmul.f32 %v814_v37, %v799_v30 }
 0xaab   : > { %819 = vrot.lane.b32.xlu0 %v816_v38, %s1709_s15 }
 0xb1d   : > { %v820_v39 = vpop.permute.xlu0 %819 }
 0xb1e   : > { %1520 = vmatmul.mubr.msk.f32.vlgmr.msra.gmra.mxu1 %vm325_vm2, %v820_v39 }
 0xb1f   : > { %1534 = vmatpush3.msra.mxu1 %v1810_v5  ;;  %1541 = vmatprep.mubr.msk.f32.mxu1 %vm1707_vm1, %v1706_v3 }
 0xb20   : > { %1535 = vmatprep.subr.mxu1 %v1706_v3 }
 0xb21   : > { %1536 = vmatpush3.msra.mxu1 %v1813_v6 }
 0xb22   : > { %1537 = vmatprep.subr.mxu1 %v1706_v3 }
 0xb23   : > { %1538 = vmatpush3.msra.mxu1 %v1821_v8 }
 0xb24   : > { %1539 = vmatprep.subr.mxu1 %v1706_v3 }
 0xb25   : > { %1540 = vmatpush3.msra.mxu1 %v1829_v11 }
 0xbde   : > { %v889_v41 = vpop.f32.mrf.mxu1 }
 0xbdf   : > { %v893_v42 = vadd.f32 %v889_v41, %v817_v40 }
 0xbe0   : > { %v1521_v43 = vpop.f32.mrf.mxu1 }
 0xbe1   : > { %v894_v44 = vmul.f32 0.5, %v893_v42 }
 0xbe3   : > { %v895_v45 = vsel %vm1864_vm5, %v893_v42, %v894_v44 }
 0xbe4   : > { %1617 = vtanh.f32 %v895_v45 }
 0xbf1   : > { %v1618_v46 = vpop.eup %1617 }
 0xbf2   : > { %v897_v47 = vadd.f32 1.0, %v1618_v46 }
 0xbf4   : > { %v898_v48 = vmul.f32 0.5, %v897_v47 }
 0xbf6   : > { %v899_v49 = vsel %vm1864_vm5, %v1618_v46, %v898_v48 }
 0xbf7   : > { %902 = vrot.lane.b32.xlu1 %v899_v49, %s1708_s14  ;;  %v900_v52 = vmul.f32 %v899_v49, %v810_v35 }
 0xc69   : > { %v903_v50 = vpop.permute.xlu1 %902 }
 0xc6a   : > { %v905_v51 = vmul.f32 %v903_v50, %v899_v49 }
 0xc6c   : > { %907 = vrot.lane.b32.xlu0 %v905_v51, %s1709_s15 }
 0xcde   : > { %v908_v53 = vpop.permute.xlu0 %907 }
 0xcdf   : > { %v910_v54 = vadd.f32 %v908_v53, %v900_v52 }
 0xce1   : > { %1619 = vtanh.f32 %v910_v54 }
 0xcee   : > { %v1620_v55 = vpop.eup %1619 }
 0xcef   : > { %913 = vrot.lane.b32.xlu1 %v1620_v55, %s1708_s14 }
 0xd61   : > { %v914_v56 = vpop.permute.xlu1 %913 }
 0xd62   : > { %v916_v57 = vmul.f32 %v914_v56, %v899_v49 }
 0xd64   : > { %919 = vrot.lane.b32.xlu0 %v916_v57, %s1709_s15 }
 0xdd6   : > { %v920_v58 = vpop.permute.xlu0 %919 }
 0xdd7   : > { %1531 = vmatmul.mubr.msk.f32.vlgmr.msra.gmra.mxu0 %vm325_vm2, %v920_v58 }
 0xdd8   : > { %1545 = vmatpush3.msra.mxu0 %v1810_v5  ;;  %1552 = vmatprep.mubr.msk.f32.mxu0 %vm1707_vm1, %v1706_v3 }
 0xdd9   : > { %1546 = vmatprep.subr.mxu0 %v1706_v3 }
 0xdda   : > { %1547 = vmatpush3.msra.mxu0 %v1813_v6 }
 0xddb   : > { %1548 = vmatprep.subr.mxu0 %v1706_v3 }
 0xddc   : > { %1549 = vmatpush3.msra.mxu0 %v1821_v8 }
 0xddd   : > { %1550 = vmatprep.subr.mxu0 %v1706_v3 }
 0xdde   : > { %1551 = vmatpush3.msra.mxu0 %v1829_v11 }
 0xe97   : > { %v989_v60 = vpop.f32.mrf.mxu0 }
 0xe98   : > { %v993_v61 = vadd.f32 %v989_v60, %v917_v59 }
 0xe99   : > { %v1532_v62 = vpop.f32.mrf.mxu0 }
 0xe9a   : > { %v994_v5 = vmul.f32 0.5, %v993_v61 }
 0xe9c   : > { %v995_v63 = vsel %vm1864_vm5, %v993_v61, %v994_v5 }
 0xe9d   : > { %1621 = vtanh.f32 %v995_v63 }
 0xeaa   : > { %v1622_v0 = vpop.eup %1621 }
 0xeab   : > { %v997_v1 = vadd.f32 1.0, %v1622_v0 }
 0xead   : > { %v998_v6 = vmul.f32 0.5, %v997_v1 }
 0xeaf   : > { %v999_v2 = vsel %vm1864_vm5, %v1622_v0, %v998_v6 }
 0xeb0   : > { %1002 = vrot.lane.b32.xlu1 %v999_v2, %s1708_s14  ;;  %v1000_v11 = vmul.f32 %v999_v2, %v910_v54 }
 0xf22   : > { %v1003_v3 = vpop.permute.xlu1 %1002 }
 0xf23   : > { %v1005_v8 = vmul.f32 %v1003_v3, %v999_v2 }
 0xf25   : > { %1007 = vrot.lane.b32.xlu0 %v1005_v8, %s1709_s15 }
 0xf97   : > { %v1008_v4 = vpop.permute.xlu0 %1007 }
 0xf98   : > { %v1010_v7 = vadd.f32 %v1008_v4, %v1000_v11 }
 0xf9a   : > { %1623 = vtanh.f32 %v1010_v7 }
 0xfa7   : > { %v1624_v9 = vpop.eup %1623 }
 0xfa8   : > { %1013 = vrot.lane.b32.xlu1 %v1624_v9, %s1708_s14 }
0x101a   : > { %v1014_v10 = vpop.permute.xlu1 %1013 }
0x101b   : > { %v1016_v12 = vmul.f32 %v1014_v10, %v999_v2 }
0x101d   : > { %1019 = vrot.lane.b32.xlu0 %v1016_v12, %s1709_s15 }
0x108f   : > { %v1020_v13 = vpop.permute.xlu0 %1019 }
0x1090   : > { %1542 = vmatmul.mubr.msk.f32.vlgmr.msra.gmra.mxu1 %vm325_vm2, %v1020_v13 }
0x1150   : > { %v1089_v15 = vpop.f32.mrf.mxu1 }
0x1151   : > { %v1093_v16 = vadd.f32 %v1089_v15, %v1017_v14 }
0x1152   : > { %v1543_v17 = vpop.f32.mrf.mxu1 }
0x1153   : > { %v1094_v18 = vmul.f32 0.5, %v1093_v16 }
0x1155   : > { %v1095_v19 = vsel %vm1864_vm5, %v1093_v16, %v1094_v18 }
0x1156   : > { %1625 = vtanh.f32 %v1095_v19 }
0x1163   : > { %v1626_v20 = vpop.eup %1625 }
0x1164   : > { %v1097_v21 = vadd.f32 1.0, %v1626_v20 }
0x1166   : > { %v1098_v22 = vmul.f32 0.5, %v1097_v21 }
0x1168   : > { %v1099_v24 = vsel %vm1864_vm5, %v1626_v20, %v1098_v22 }
0x1169   : > { %1102 = vrot.lane.b32.xlu1 %v1099_v24, %s1708_s14  ;;  %v1100_v27 = vmul.f32 %v1099_v24, %v1010_v7 }
0x11db   : > { %v1103_v25 = vpop.permute.xlu1 %1102 }
0x11dc   : > { %v1105_v26 = vmul.f32 %v1103_v25, %v1099_v24 }
0x11de   : > { %1107 = vrot.lane.b32.xlu0 %v1105_v26, %s1709_s15 }
0x1250   : > { %v1108_v28 = vpop.permute.xlu0 %1107 }
0x1251   : > { %v1110_v29 = vadd.f32 %v1108_v28, %v1100_v27 }
0x1253   : > { %1627 = vtanh.f32 %v1110_v29 }
0x1260   : > { %v1628_v30 = vpop.eup %1627 }
0x1261   : > { %1113 = vrot.lane.b32.xlu1 %v1628_v30, %s1708_s14 }
0x12d3   : > { %v1114_v31 = vpop.permute.xlu1 %1113 }
0x12d4   : > { %v1116_v32 = vmul.f32 %v1114_v31, %v1099_v24 }
0x12d6   : > { %1119 = vrot.lane.b32.xlu0 %v1116_v32, %s1709_s15 }
0x1348   : > { %v1120_v33 = vpop.permute.xlu0 %1119 }
0x1349   : > { %1553 = vmatmul.mubr.msk.f32.vlgmr.msra.gmra.mxu0 %vm325_vm2, %v1120_v33 }
0x1409   : > { %v1189_v35 = vpop.f32.mrf.mxu0 }
0x140a   : > { %v1193_v36 = vadd.f32 %v1189_v35, %v1117_v34 }
0x140b   : > { %v1554_v37 = vpop.f32.mrf.mxu0 }
0x140c   : > { %v1194_v38 = vmul.f32 0.5, %v1193_v36 }
0x140e   : > { %v1195_v39 = vsel %vm1864_vm5, %v1193_v36, %v1194_v38 }
0x140f   : > { %1629 = vtanh.f32 %v1195_v39 }
0x141c   : > { %v1630_v40 = vpop.eup %1629 }
0x141d   : > { %v1197_v41 = vadd.f32 1.0, %v1630_v40 }
0x141f   : > { %v1198_v42 = vmul.f32 0.5, %v1197_v41 }
0x1421   : > { %v1199_v43 = vsel %vm1864_vm5, %v1630_v40, %v1198_v42 }
0x1422   : > { %1202 = vrot.lane.b32.xlu1 %v1199_v43, %s1708_s14  ;;  %v1200_v46 = vmul.f32 %v1199_v43, %v1110_v29 }
0x1494   : > { %v1203_v44 = vpop.permute.xlu1 %1202 }
0x1495   : > { %v1205_v45 = vmul.f32 %v1203_v44, %v1199_v43 }
0x1497   : > { %1207 = vrot.lane.b32.xlu0 %v1205_v45, %s1709_s15 }
0x1509   : > { %v1208_v47 = vpop.permute.xlu0 %1207 }
0x150a   : > { %v1210_v48 = vadd.f32 %v1208_v47, %v1200_v46 }
0x150c   : > { %1631 = vtanh.f32 %v1210_v48 }
0x1519   : > { %v1632_v49 = vpop.eup %1631 }
0x151a   : > { %1213 = vrot.lane.b32.xlu1 %v1632_v49, %s1708_s14 }
0x151e   : > { %1224 = vrot.lane.b32.xlu1 %v1210_v48, %s1710_s16 }
0x158c   : > { %v1214_v50 = vpop.permute.xlu1 %1213 }
0x158d   : > { %v1216_v51 = vmul.f32 %v1214_v50, %v1199_v43 }
0x158f   : > { %1218 = vrot.lane.b32.xlu0 %v1216_v51, %s1709_s15 }
0x1590   : > { %v1225_v23 = vpop.permute.xlu1 %1224 }
0x1591   : > { %1227 = vst.msk [vmem:[#allocation4] sm:$0x1] %vm1221_vm6, %v1225_v23 }
0x15fe   : > { %1231 = sbr.rel (%p1400_p2) target bundleno = 6154 (0x180a), region = 64 }
0x1601   : > { %v1219_v52 = vpop.permute.xlu0 %1218 }
0x1602   : > { %1222 = vst.msk [vmem:[#allocation3] sm:$0x1] %vm1221_vm6, %v1219_v52 }
0x1603   : > { %v1235_v53 = vld [vmem:[%s2029_s6 + $0x18] sm:$0xff]  ;;  %v1711_v54 = vmov 0.0   ;;  %v1234_v55 = vld [vmem:[%s2029_s6 + $0x10] sm:$0xff]  ;;  %vm1712_vm7 = vmmov 0   ;;  %v1233_v56 = vld [vmem:[%s2029_s6 + $0x8] sm:$0xff]  ;;  %vm1309_vm8 = vcmask 122880  }
0x1604   : > { %1555 = vmatprep.subr.mxu0 %v1711_v54  ;;  %1563 = vmatprep.mubr.msk.f32.mxu0 %vm1712_vm7, %v1711_v54  ;;  %v1232_v57 = vld [vmem:[%s2029_s6] sm:$0xff] }
0x1605   : > { %1556 = vmatpush3.msra.mxu0 %v1235_v53  ;;  %v1236_v58 = vld [vmem:[%s2030_s7] sm:$0x1] }
0x1606   : > { %1557 = vmatprep.subr.mxu0 %v1711_v54 }
0x1607   : > { %1558 = vmatpush3.msra.mxu0 %v1234_v55 }
0x1608   : > { %1559 = vmatprep.subr.mxu0 %v1711_v54 }
0x1609   : > { %1560 = vmatpush3.msra.mxu0 %v1233_v56 }
0x160a   : > { %1561 = vmatprep.subr.mxu0 %v1711_v54 }
0x160b   : > { %1562 = vmatpush3.msra.mxu0 %v1232_v57 }
0x160c   : > { %1564 = vmatmul.mubr.msk.f32.vlgmr.msra.gmra.mxu0 %vm325_vm2, %v1219_v52 }
0x16cc   : > { %v1305_v59 = vpop.f32.mrf.mxu0 }
0x16cd   : > { %v1306_v60 = vadd.f32 %v1305_v59, %v1236_v58 }
0x16ce   : > { %v1565_v61 = vpop.f32.mrf.mxu0 }
0x16cf   : > { %v1310_v62 = vsel %vm1309_vm8, %v1306_v60, -inf }
0x16d0   : > { %1311 = vmax.xlane.f32.xlu0 %v1310_v62 }
0x1759   : > { %v1312_v5 = vpop.xlane.xlu0 %1311 }
0x175a   : > { %v1313_v63 = vsub.f32 %v1306_v60, %v1312_v5 }
0x175c   : > { %v1314_v0 = vmul.f32 1.442695, %v1313_v63 }
0x175e   : > { %1633 = vpow2.f32 %v1314_v0 }
0x176b   : > { %v1634_v1 = vpop.eup %1633 }
0x176c   : > { %v1316_v6 = vsel %vm1309_vm8, %v1634_v1, 0.0 }
0x176d   : > { %1317 = vadd.xlane.f32.xlu0 %v1316_v6 }
0x17f6   : > { %v1318_v2 = vpop.xlane.xlu0 %1317 }
0x17f7   : > { %1635 = vlog2.f32 %v1318_v2 }
0x1804   : > { %v1636_v3 = vpop.eup %1635 }
0x1805   : > { %v1320_v8 = vmul.f32 0.6931472, %v1636_v3 }
0x1807   : > { %v1321_v11 = vsub.f32 %v1313_v63, %v1320_v8 }
0x1809   : > { %1322 = vst.msk [vmem:[#allocation8] sm:$0x1] %vm1309_vm8, %v1321_v11 }
0x180a PF: > { %p1580_p3 = scmp.eq.s32.totalorder %s1765_s28, 1  ;;  %s1713_s29 = smov [#allocation8]  }
0x180b   : > { %s1330_s30 = sshll.u32 %s1713_s29, 4  ;;  %s1331_s30 = int_to_ptr.vmem [resolvable:$true] %s1330_s30 }
0x180c   : > { %s1663_s9 = scalar_lea.vmem %s1331_s30, 16  ;;  %s1669_s10 = scalar_lea.vmem %s1331_s30, 32 }
0x180d   : > { %p1664_p4 = scmp.ne.s32.totalorder %s1331_s30, %s1663_s9  ;;  %p1670_p7 = scmp.lt.s32.totalorder %s1331_s30, %s1331_s30 }
0x180e   : > { %p1671_p8 = scmp.lt.s32.totalorder %s1669_s10, %s1663_s9 }
0x180f   : > { %p1665_p5 = pnand %p1664_p4, %p1580_p3 }
0x1810   : > { %p1672_p9 = por %p1671_p8, %p1670_p7 }
0x1811   : > { %p1666_p6 = pneg %p1665_p5 }
0x1813   : > { %p1673_p10 = pnand %p1672_p9, %p1666_p6 }
0x1815   : > { %1676 = shalt.err (!%p1673_p10)
}
0x1816   : > { %1571 = dma.vmem_to_hbm [thread:$0]  (%p1580_p3), %s1331_s30, 16, %s2031_s8, [#allocation7]  }
0x1817   : > { %1696 = dma.done.wait (%p1580_p3), [#allocation7], 16  }
0x1818   : > { %1698 = vsyncadd (%p1580_p3), [#allocation7], 4294967280 }
0x1819 PF: > { %s20_s27 = sadd.s32 1, %s1701_s27  }
0x181a   : > { %p17_p11 = scmp.ge.s32.totalorder %s20_s27, 4  }
0x181c   :  { %19 = sbr.rel (!%p17_p11) target bundleno = 2 (0x2), region = 92 }
0x1821   :  { %1343 = vsyncpa [#allocation6], 1 }
0x1822   :  { %1345 = vsyncpa [#allocation6 + $0x1], 1 }
0x1823   :  { %1346 = vsyncpa [#allocation7], 1 }
0x1824   :  { %1348 = vsyncpa [#allocation7 + $0x1], 1 }

</bundles_post_ra>
